<compile_context>
chip_gen: v6e
topology: v6e:2x2x1
jax: 0.10.0
libtpu: 0.0.40
codegen_flags: <defaults>
</compile_context>

<pallas_src>
import math

import jax
import jax.numpy as jnp
from jax.experimental import pallas as pl
from jax.experimental.pallas import tpu as pltpu


def _make_pe(d_model: int, max_len: int = 5000, base: int = 10000) -> jnp.ndarray:
    """Replicates the PyTorch __init__ buffer exactly: pe shape (max_len, d_model)."""
    position = jnp.arange(0, max_len, dtype=jnp.float32)[:, None]            # (L, 1)
    div_term = jnp.exp(
        jnp.arange(0, d_model, 2, dtype=jnp.float32) * -(math.log(base) / d_model)
    )                                                                         # (ceil(D/2),)
    angles = position * div_term                                              # (L, ceil(D/2))
    pe = jnp.zeros((max_len, d_model), dtype=jnp.float32)
    pe = pe.at[:, 0::2].set(jnp.sin(angles))
    pe = pe.at[:, 1::2].set(jnp.cos(angles))
    return pe


def _add_pe_kernel(x_ref, pe_ref, o_ref):
    # Path A: x_ref (t_b, S, D),  pe_ref (S, D)       -> broadcast over batch.
    # Path B: x_ref (t_rows, D),  pe_ref (t_rows, D)  -> elementwise.
    # Add in f32 (pe is kept as an f32 table, like the PyTorch buffer) and cast
    # on store, so bf16 inputs get the same add precision as eager PyTorch.
    o_ref[...] = (x_ref[...].astype(jnp.float32) + pe_ref[...]).astype(o_ref.dtype)


def _device_defaults() -> tuple:
    """(target_block_bytes, vmem_limit_bytes) per TPU generation.

    v7x : bigger tiles amortize per-step overhead vs 3.2 TB/s HBM; stay well
          under the 64 MiB physical VMEM.
    v6e : 128 MiB physical VMEM -> plenty of slack, 4 MiB tiles ~free win.
    v5e / unknown: previously-validated settings (explicit 32 MiB scoped limit
          is required on v5e whose scoped default is only 16 MiB).
    """
    kind = ""
    try:
        kind = jax.devices()[0].device_kind.lower()
    except Exception:
        pass
    if "v7" in kind:
        return 5 * 1024 * 1024, 48 * 1024 * 1024
    if "v6" in kind:
        return 4 * 1024 * 1024, 64 * 1024 * 1024
    return 2 * 1024 * 1024, 32 * 1024 * 1024


def positional_encoding_forward(
    x: jnp.ndarray,
    pe: jnp.ndarray,
    *,
    target_block_bytes: int | None = None,
    vmem_limit_bytes: int | None = None,
    donate_x: bool = False,
) -> jnp.ndarray:
    """x: (B, S, D); pe: (max_len, D) f32 table. Returns x + pe[:S] (broadcast over batch)."""
    B, S, D = x.shape
    max_len, d_pe = pe.shape
    if d_pe != D:
        raise ValueError(f"pe d_model={d_pe} does not match x d_model={D}")
    if S > max_len:
        raise ValueError(f"seq_len={S} exceeds precomputed max_len={max_len}")

    def_tb, def_vm = _device_defaults()
    if target_block_bytes is None:
        target_block_bytes = def_tb
    if vmem_limit_bytes is None:
        vmem_limit_bytes = def_vm

    # Keep pe in f32 (matches the PyTorch f32 buffer); kernel adds in f32.
    pe_slice = pe[:S, :].astype(jnp.float32)

    itemsize = jnp.dtype(x.dtype).itemsize
    rows, lane = S, D
    per_batch_bytes = rows * lane * itemsize
    sub_mult = max(8, 32 // itemsize)  # sublane multiple: 8 (f32) / 16 (bf16) / 32 (int8)

    # Advisory: this call is HBM-bound (read x + write out + read pe once).
    cost = pl.CostEstimate(
        flops=B * rows * lane,
        bytes_accessed=2 * B * per_batch_bytes + rows * lane * 4,
        transcendentals=0,
    )

    if B > 1 and 2 * per_batch_bytes <= target_block_bytes:
        # ---------- Path A: batch-folded blocks (small S*D) -----------------
        # Fold several batch elements into one block so each grid step moves
        # ~target_block_bytes; pe block index is constant -> DMA'd once.
        t_b = max(1, target_block_bytes // per_batch_bytes)
        t_b = min(t_b, (B + 1) // 2)  # >= 2 grid steps so v7x megacore keeps both TCs busy
        grid = (pl.cdiv(B, t_b),)
        in_specs = [
            pl.BlockSpec((t_b, rows, lane), lambda b: (b, 0, 0)),
            pl.BlockSpec((rows, lane), lambda b: (0, 0)),  # constant index -> reused every step
        ]
        out_specs = pl.BlockSpec((t_b, rows, lane), lambda b: (b, 0, 0))
        dim_sem = ("parallel",)
    else:
        # ---------- Path B: row-tiled blocks, batch innermost ---------------
        target_rows = max(sub_mult, target_block_bytes // max(1, lane * itemsize))
        if rows <= target_rows:
            t_rows = rows  # full extent along second-last dim: always a legal block
        else:
            t_rows = max(sub_mult, (target_rows // sub_mult) * sub_mult)
        # Batch is the innermost grid axis -> pe block index constant across it,
        # so its DMA is skipped for B-1 of every B steps.
        grid = (pl.cdiv(rows, t_rows), B)
        in_specs = [
            pl.BlockSpec((None, t_rows, lane), lambda s, b: (b, s, 0)),
            # NOTE: pipeline_mode=pl.Buffered(1) on pe would save one buffer of
            # VMEM; omitted — irrelevant at these tile sizes, avoids boundary stalls.
            pl.BlockSpec((t_rows, lane), lambda s, b: (s, 0)),
        ]
        out_specs = pl.BlockSpec((None, t_rows, lane), lambda s, b: (b, s, 0))
        dim_sem = ("parallel", "parallel")

    return pl.pallas_call(
        _add_pe_kernel,
        out_shape=jax.ShapeDtypeStruct((B, S, D), x.dtype),
        grid=grid,
        in_specs=in_specs,
        out_specs=out_specs,
        compiler_params=pltpu.CompilerParams(
            dimension_semantics=dim_sem,
            vmem_limit_bytes=vmem_limit_bytes,
        ),
        cost_estimate=cost,
        input_output_aliases={0: 0} if donate_x else {},
    )(x, pe_slice)


if __name__ == "__main__":
    key = jax.random.PRNGKey(0)

    # Case 1: shapes implied by the module's forward (batch=2, seq=8, d_model=32)
    # -> batch-folded path (Path A), grid has 2 steps.
    B, S, D = 2, 8, 32
    MAX_LEN = 64
    pe = _make_pe(D, max_len=MAX_LEN)
    x = jax.random.normal(key, (B, S, D), dtype=jnp.float32)
    out = jax.block_until_ready(positional_encoding_forward(x, pe))
    ref = x + pe[None, :S, :]
    assert out.shape == (B, S, D) and out.dtype == x.dtype
    assert jnp.allclose(out, ref, atol=1e-6), "mismatch vs reference (small / Path A)"

    # Case 2: forced row-tiled path (Path B) with multiple row tiles per batch,
    # pe tile reused across the inner batch axis, and a partial edge tile.
    B2, S2, D2 = 2, 72, 128
    key2 = jax.random.fold_in(key, 1)
    pe_big = _make_pe(D2, max_len=128)
    x_big = jax.random.normal(key2, (B2, S2, D2), dtype=jnp.float32)
    out_big = jax.block_until_ready(
        positional_encoding_forward(x_big, pe_big, target_block_bytes=8 * 1024)
    )
    ref_big = x_big + pe_big[None, :S2, :]
    assert jnp.allclose(out_big, ref_big, atol=1e-6), "mismatch vs reference (tiled / Path B)"

    # Case 3: bf16 input exercising Path A with t_b > 1 and a partial batch
    # group; add is done in f32 in-kernel (PyTorch-parity precision), output
    # stays bf16 (documented dtype difference vs eager PyTorch promotion).
    B3, S3, D3 = 3, 16, 64
    key3 = jax.random.fold_in(key, 2)
    pe_bf = _make_pe(D3, max_len=32)
    x_bf = jax.random.normal(key3, (B3, S3, D3), dtype=jnp.bfloat16)
    out_bf = jax.block_until_ready(positional_encoding_forward(x_bf, pe_bf))
    ref_bf = (x_bf.astype(jnp.float32) + pe_bf[None, :S3, :]).astype(jnp.bfloat16)
    assert out_bf.dtype == jnp.bfloat16
    assert jnp.allclose(
        out_bf.astype(jnp.float32), ref_bf.astype(jnp.float32), atol=1e-2, rtol=1e-2
    ), "mismatch vs reference (bf16 / Path A folded)"

    print("KERNEL_OK")
</pallas_src>

<mosaic_0001>
module attributes {stable_mosaic.version = 11 : i64} {
  func.func @_add_pe_kernel(%arg0: i32, %arg1: memref<1x8x32xf32, #tpu.memory_space<vmem>>, %arg2: memref<8x32xf32, #tpu.memory_space<vmem>>, %arg3: memref<1x8x32xf32, #tpu.memory_space<vmem>>) attributes {dimension_semantics = [#tpu.dimension_semantics<parallel>], iteration_bounds = array<i64: 2>, scalar_prefetch = 0 : i64, scratch_operands = 0 : i64, tpu.core_type = #tpu.core_type<tc>, window_params = [{transform_indices = @transform_0, window_bounds = array<i64: 1, 8, 32>}, {pipeline_mode = #tpu.pipeline_mode<synchronous>, transform_indices = @transform_1, window_bounds = array<i64: 8, 32>}, {transform_indices = @transform_2, window_bounds = array<i64: 1, 8, 32>}]} {
    %c0 = arith.constant 0 : index
    %c0_0 = arith.constant 0 : index
    %c0_1 = arith.constant 0 : index
    %0 = vector.load %arg1[%c0, %c0_0, %c0_1] : memref<1x8x32xf32, #tpu.memory_space<vmem>>, vector<1x8x32xf32>
    %c0_2 = arith.constant 0 : index
    %c0_3 = arith.constant 0 : index
    %1 = vector.load %arg2[%c0_2, %c0_3] : memref<8x32xf32, #tpu.memory_space<vmem>>, vector<8x32xf32>
    %2 = vector.shape_cast %1 : vector<8x32xf32> to vector<1x8x32xf32>
    %3 = arith.addf %0, %2 : vector<1x8x32xf32>
    %c0_4 = arith.constant 0 : index
    %c0_5 = arith.constant 0 : index
    %c0_6 = arith.constant 0 : index
    %4 = vector.load %arg3[%c0_4, %c0_5, %c0_6] : memref<1x8x32xf32, #tpu.memory_space<vmem>>, vector<1x8x32xf32>
    tpu.vector_store %arg3[%c0_4, %c0_5, %c0_6], %3 {strides = array<i32>} : memref<1x8x32xf32, #tpu.memory_space<vmem>>, vector<1x8x32xf32>,
    return
  }
  func.func @transform_0(%arg0: i32) -> (i32, i32, i32) {
    %c0_i32 = arith.constant 0 : i32
    %c0_i32_0 = arith.constant 0 : i32
    %c0_i32_1 = arith.constant 0 : i32
    return %arg0, %c0_i32, %c0_i32_0 : i32, i32, i32
  }
  func.func @transform_1(%arg0: i32) -> (i32, i32) {
    %c0_i32 = arith.constant 0 : i32
    %c0_i32_0 = arith.constant 0 : i32
    %c0_i32_1 = arith.constant 0 : i32
    return %c0_i32, %c0_i32_0 : i32, i32
  }
  func.func @transform_2(%arg0: i32) -> (i32, i32, i32) {
    %c0_i32 = arith.constant 0 : i32
    %c0_i32_0 = arith.constant 0 : i32
    %c0_i32_1 = arith.constant 0 : i32
    return %arg0, %c0_i32, %c0_i32_0 : i32, i32, i32
  }
}

</mosaic_0001>

<bundles_post_ra>
// kernel: tpu_custom_call.1
= control target key start
LH: loop header
LB: loop body
LE: loop exit
PB: predicated region body
PF: predicated region fallthrough
CT: control target
= control target key end

     0   :  { %7 = vsyncpa [#allocation3], 0  ;;  %s650_s0 = inlined_call_operand.hbm [shape: f32[2,8,32], index: 0, kind: input, shape index: {}]   ;;  %s651_s1 = inlined_call_operand.hbm [shape: f32[8,32], index: 1, kind: input, shape index: {}]   ;;  %s652_s2 = inlined_call_operand.hbm [shape: f32[2,8,32], index: 2, kind: output, shape index: {}]  }
   0x1   :  { %9 = vsyncpa [#allocation3 + $0x1], 0 }
   0x2   :  { %10 = vsyncpa [#allocation6], 0 }
   0x3   :  { %11 = vsyncpa [#allocation4], 0 }
   0x4   :  { %13 = vsyncpa [#allocation4 + $0x1], 0  ;;  %s484_s9 = smov 0   ;;  %s486_s10 = smov 0  }
   0x5   :  { %s488_s11 = smov 0   ;;  %s490_s12 = smov 0  }
   0x6 LB: > { %s505_s13 = sadd.s32 4294967295, %s464_s12   ;;  %s271_s14 = sadd.s32 4294967294, %s464_s12   ;;  %s464_s12 = sphi %s490_s12, %s675_s12   ;;  %s460_s11 = sphi %s488_s11, %s674_s11   ;;  %s456_s10 = sphi %s486_s10, %s673_s10   ;;  %s452_s9 = sphi %s484_s9, %s672_s9  }
   0x7   : > { %p39_p0 = scmp.ne.s32.totalorder %s456_s10, %s452_s9  ;;  %p653_p1 = scmp.eq.s32.totalorder %s505_s13, 0 }
   0x8   : > { %p90_p3 = scmp.eq.s32.totalorder %s271_s14, 1  ;;  %p272_p5 = scmp.ge.s32.totalorder %s464_s12, 1 }
   0x9   : > { %p514_p4 = por %p653_p1, %p39_p0  ;;  %p97_p7 = scmp.lt.s32.totalorder %s464_s12, 3 }
   0xa   : > { %p519_p6 = por %p90_p3, %p39_p0  ;;  %s466_s18 = smov [#allocation5]  }
   0xb   : > { %s657_s15 = scalar_select %p514_p4, 1, 0 }
   0xc   : > { %s658_s16 = scalar_select %p519_p6, 1, 0 }
   0xd   : > { %p524_p8 = pnand %p272_p5, %p97_p7  ;;  %s110_s19 = sshll.u32 %s466_s18, 4  ;;  %s111_s19 = int_to_ptr.vmem [resolvable:$true] %s110_s19 }
   0xe   : > { %s532_s20 = sadd.s32 1, %s464_s12   ;;  %s26_s24 = sadd.s32 1, %s460_s11 }
   0xf   : > { %s659_s17 = scalar_select %p524_p8, 1, 0 }
  0x10   : > { %p293_p10 = pneg %p524_p8  ;;  %s23_s22 = ssub.s32 %s464_s12, %s532_s20 }
  0x11   : > { %p542_p12 = scmp.eq.s32.totalorder %s23_s22, 0  ;;  %p33_p13 = scmp.ne.s32.totalorder %s460_s11, %s456_s10 }
  0x12   : > { %p536_p11 = pnand %p293_p10, %p653_p1  ;;  %s353_s25 = scalar_lea.vmem %s111_s19, 128 }
  0x13   : > { %p354_p3 = scmp.ne.s32.totalorder %s111_s19, %s353_s25  ;;  %p361_p9 = scmp.lt.s32.totalorder %s111_s19, %s111_s19 }
  0x14   : > { %p344_p0 = pneg %p536_p11  ;;  %p362_p2 = scmp.lt.s32.totalorder %s353_s25, %s353_s25 }
  0x16   : > { %p356_p5 = pnand %p354_p3, %p344_p0  ;;  %p363_p10 = por %p362_p2, %p361_p9 }
  0x18   : > { %p357_p7 = pneg %p356_p5 }
  0x1a   : > { %p364_p1 = pnand %p363_p10, %p357_p7 }
  0x1c   : > { %367 = shalt.err (!%p364_p1)
}
  0x1d   : > { %296 = dma.hbm_to_vmem [thread:$0]  (!%p536_p11), %s651_s1, 128, %s111_s19, [#allocation6]  }
  0x1e   : > { %s559_s28 = scalar_select %p542_p12, %s460_s11, %s26_s24  }
  0x1f   : > { %p34_p1 = scmp.eq.s32.totalorder %s464_s12, 0  ;;  %p662_p2 = scmp.eq.s32.totalorder %s505_s13, 1 }
  0x20   : > { %p306_p0 = scmp.lt.s32.totalorder %s464_s12, 2  ;;  %s121_s30 = sand.u32 1, %s460_s11  }
  0x21   : > { %p567_p9 = por %p662_p2, %p33_p13  ;;  %p35_p3 = por %p34_p1, %p33_p13 }
  0x22   : > { %s275_s3 = sshll.u32 %s121_s30, 3  ;;  %s276_s4 = sshll.u32 %s464_s12, 7 }
  0x23   : > { %s663_s29 = scalar_select %p567_p9, 1, 0 }
  0x24   : > { %s580_s7 = scalar_lea.hbm %s650_s0, %s276_s4  ;;  %s125_s8 = scalar_lea.vmem [#allocation2], %s275_s3 }
  0x25   : > { %s132_s14 = sshll.u32 %s125_s8, 4  ;;  %p582_p11 = pnand %p306_p0, %p35_p3  ;;  %s133_s14 = int_to_ptr.vmem [resolvable:$true] %s132_s14 }
  0x26   : > { %s122_s19 = scalar_lea.sflag [#allocation3], %s121_s30  ;;  %s368_s21 = scalar_lea.hbm %s580_s7, 128 }
  0x27   : > { %p369_p12 = scmp.ne.s32.totalorder %s580_s7, %s368_s21  ;;  %p370_p13 = pneg %p582_p11 }
  0x28   : > { %s373_s24 = scalar_lea.hbm %s650_s0, 256  ;;  %p374_p10 = scmp.lt.s32.totalorder %s580_s7, %s650_s0 }
  0x29   : > { %p371_p5 = pnand %p370_p13, %p369_p12  ;;  %p375_p1 = scmp.lt.s32.totalorder %s373_s24, %s368_s21 }
  0x2b   : > { %p372_p7 = pneg %p371_p5  ;;  %p376_p2 = por %p375_p1, %p374_p10 }
  0x2d   : > { %p377_p0 = pnand %p376_p2, %p372_p7 }
  0x2f   : > { %380 = shalt.err (!%p377_p0)
}
  0x30   : > { %s381_s27 = scalar_lea.vmem %s133_s14, 128  ;;  %s467_s30 = smov [#allocation2]  }
  0x31   : > { %p382_p3 = scmp.ne.s32.totalorder %s133_s14, %s381_s27  ;;  %s386_s3 = sshll.u32 %s467_s30, 4  ;;  %s387_s3 = int_to_ptr.vmem [resolvable:$false] %s386_s3 }
  0x32   : > { %s388_s4 = scalar_lea.vmem %s387_s3, 256  ;;  %p389_p12 = scmp.lt.s32.totalorder %s133_s14, %s387_s3 }
  0x33   : > { %p384_p6 = pnand %p382_p3, %p370_p13  ;;  %p390_p5 = scmp.lt.s32.totalorder %s388_s4, %s381_s27 }
  0x35   : > { %p385_p9 = pneg %p384_p6  ;;  %p391_p4 = por %p390_p5, %p389_p12 }
  0x37   : > { %p392_p8 = pnand %p391_p4, %p385_p9 }
  0x39   : > { %395 = shalt.err (!%p392_p8)
}
  0x3a   : > { %300 = dma.hbm_to_vmem [thread:$0]  (!%p582_p11), %s580_s7, 128, %s133_s14, %s122_s19  }
  0x3b   : > { %p665_p7 = scmp.ne.s32.totalorder %s659_s17, 0 }
  0x3c   : > { %s603_s5 = sand.u32 (!%p665_p7), 1, %s456_s10   ;;  %p666_p6 = scmp.ne.s32.totalorder (!%p665_p7), %s657_s15, 0 }
  0x3d   : > { %141 = sbr.rel (%p665_p7) target bundleno = 95 (0x5f), region = 28  ;;  %s278_s6 = sshll.u32 (!%p665_p7), %s603_s5, 3 }
  0x3e   : > { %s144_s8 = scalar_lea.sflag (!%p665_p7), [#allocation3], %s603_s5  ;;  %s147_s21 = scalar_lea.vmem (!%p665_p7), [#allocation2], %s278_s6 }
  0x42   : > { %439 = dma.done.wait (%p666_p6), %s144_s8, 128  }
  0x43   : > { %441 = vsyncadd (%p666_p6), %s144_s8, 4294967168  ;;  %p667_p4 = scmp.eq.s32.totalorder %s505_s13, 0 }
  0x45   : > { %443 = dma.done.wait (%p667_p4), [#allocation6], 128   ;;  %p668_p8 = pmov %p667_p4 }
  0x46   : > { %s171_s17 = scalar_lea.vmem [#allocation7], %s278_s6  ;;  %s282_s14 = sshll.u32 %s505_s13, 7  ;;  %v172_v0 = vld [vmem:[%s147_s21] sm:$0xff]  ;;  %v173_v1 = vld [vmem:[#allocation5] sm:$0xff]  ;;  %vm175_vm0 = vcmask 261120  }
  0x47   : > { %445 = vsyncadd (%p668_p8), [#allocation6], 4294967168  ;;  %s191_s7 = sshll.u32 %s171_s17, 4  ;;  %v174_v2 = vadd.f32 %v173_v1, %v172_v0  ;;  %s189_s19 = scalar_lea.hbm %s652_s2, %s282_s14  ;;  %s192_s7 = int_to_ptr.vmem [resolvable:$true] %s191_s7 }
  0x48   : > { %s178_s22 = scalar_lea.sflag [#allocation4], %s603_s5  ;;  %s396_s23 = scalar_lea.vmem %s192_s7, 128 }
  0x49   : > { %176 = vst.msk [vmem:[%s171_s17] sm:$0xff] %vm175_vm0, %v174_v2  ;;  %p397_p9 = scmp.ne.s32.totalorder %s192_s7, %s396_s23  ;;  %p669_p11 = scmp.ne.s32.totalorder %s663_s29, 0 }
  0x4a   : > { %s468_s24 = smov [#allocation7]  }
  0x4b   : > { %p398_p13 = pnand %p397_p9, %p669_p11  ;;  %s400_s25 = sshll.u32 %s468_s24, 4  ;;  %s401_s25 = int_to_ptr.vmem [resolvable:$false] %s400_s25 }
  0x4c   : > { %s402_s13 = scalar_lea.vmem %s401_s25, 256  ;;  %p403_p1 = scmp.lt.s32.totalorder %s192_s7, %s401_s25 }
  0x4d   : > { %p399_p10 = pneg %p398_p13  ;;  %p404_p2 = scmp.lt.s32.totalorder %s402_s13, %s396_s23 }
  0x4f   : > { %p405_p0 = por %p404_p2, %p403_p1 }
  0x51   : > { %p406_p3 = pnand %p405_p0, %p399_p10 }
  0x53   : > { %409 = shalt.err (!%p406_p3)
}
  0x54   : > { %s410_s26 = scalar_lea.hbm %s189_s19, 128  ;;  %s414_s3 = scalar_lea.hbm %s652_s2, 256 }
  0x55   : > { %p411_p12 = scmp.ne.s32.totalorder %s189_s19, %s410_s26  ;;  %p415_p6 = scmp.lt.s32.totalorder %s189_s19, %s652_s2 }
  0x56   : > { %p416_p4 = scmp.lt.s32.totalorder %s414_s3, %s410_s26 }
  0x57   : > { %p412_p5 = pnand %p411_p12, %p669_p11 }
  0x58   : > { %p417_p8 = por %p416_p4, %p415_p6 }
  0x59   : > { %p413_p7 = pneg %p412_p5 }
  0x5b   : > { %p418_p9 = pnand %p417_p8, %p413_p7 }
  0x5d   : > { %421 = shalt.err (!%p418_p9)
}
  0x5e   : > { %291 = dma.vmem_to_hbm [thread:$0]  (%p669_p11), %s192_s7, 128, %s189_s19, %s178_s22  }
  0x5f PF: > { %s203_s6 = sand.u32 1, %s452_s9   ;;  %p670_p13 = scmp.ne.s32.totalorder %s658_s16, 0 }
  0x60   : > { %p671_p10 = scmp.ge.s32.totalorder %s464_s12, 2  ;;  %s204_s8 = scalar_lea.sflag [#allocation4], %s203_s6 }
  0x62   : > { %p302_p1 = pnand %p671_p10, %p670_p13 }
  0x64   : > { %p303_p2 = pneg %p302_p1 }
  0x66   : > { %447 = dma.done.wait (%p303_p2), %s204_s8, 128  }
  0x67   : > { %449 = vsyncadd (%p303_p2), %s204_s8, 4294967168  ;;  %p16_p0 = scmp.ge.s32.totalorder %s532_s20, 4   ;;  %s672_s9 = smov %s456_s10 }
  0x68   : > { %s673_s10 = smov %s460_s11  ;;  %s674_s11 = smov %s559_s28 }
  0x69   : > { %s675_s12 = smov %s532_s20  ;;  %18 = sbr.rel (!%p16_p0) target bundleno = 6 (0x6), region = 77 }
  0x6e   :  { %209 = vsyncpa [#allocation3], 1 }
  0x6f   :  { %211 = vsyncpa [#allocation3 + $0x1], 1 }
  0x70   :  { %212 = vsyncpa [#allocation6], 1 }
  0x71   :  { %213 = vsyncpa [#allocation4], 1 }
  0x72   :  { %215 = vsyncpa [#allocation4 + $0x1], 1 }

</bundles_post_ra>
